<compile_context>
chip_gen: v6e
topology: v6e:2x2x1
jax: 0.10.0
libtpu: 0.0.40
codegen_flags: <defaults>
</compile_context>

<pallas_src>
import functools

import jax
import jax.numpy as jnp
from jax import lax
from jax.experimental import pallas as pl
from jax.experimental.pallas import tpu as pltpu

_EPS = 1e-7  # matches torchvision.ops.generalized_box_iou_loss eps


# --------------------------------------------------------------------------- #
# Pallas kernel
# --------------------------------------------------------------------------- #
def denoise_loss_kernel(lp_ref, lab_ref, colmap_ref, rowmap_ref, vlane_ref,
                        pos_ref, neg_ref, bbox_ref, tgt_ref, tgt1_ref,
                        loss_ref,
                        *, w_string, w_ce, w_l1, w_giou, w_l11, w_giou1):
    i = pl.program_id(0)

    # ------------- small losses (class CE + L1 + GIoU): once, at step 0 -------
    @pl.when(i == 0)
    def _():
        def ce_sum_fixed_class(logits_ref, cls_idx):
            x = logits_ref[...].astype(jnp.float32)                    # (B, C)
            m = jnp.max(x, axis=-1, keepdims=True)
            lse = m + jnp.log(jnp.sum(jnp.exp(x - m), axis=-1, keepdims=True))
            lane = lax.broadcasted_iota(jnp.int32, x.shape, 1)
            picked = jnp.sum(jnp.where(lane == cls_idx, x, 0.0),
                             axis=-1, keepdims=True)
            return jnp.sum(lse - picked)

        # stack([pos, neg], -1) with ground truth [[1, 0]] per sample:
        # pos rows -> target class 1, neg rows -> target class 0 (mean over 2B).
        class_sum = (ce_sum_fixed_class(pos_ref, 1)
                     + ce_sum_fixed_class(neg_ref, 0))

        bbox = bbox_ref[...].astype(jnp.float32)                       # (B, 8)

        def box_losses(off, t_ref):
            t = t_ref[...].astype(jnp.float32)                         # (B, 4)
            cx = bbox[:, off + 0:off + 1]
            cy = bbox[:, off + 1:off + 2]
            w = bbox[:, off + 2:off + 3]
            h = bbox[:, off + 3:off + 4]
            px1 = cx - 0.5 * w
            py1 = cy - 0.5 * h
            px2 = cx + 0.5 * w
            py2 = cy + 0.5 * h
            tx1 = t[:, 0:1]
            ty1 = t[:, 1:2]
            tx2 = t[:, 2:3]
            ty2 = t[:, 3:4]

            l1_sum = jnp.sum(jnp.abs(px1 - tx1) + jnp.abs(py1 - ty1)
                             + jnp.abs(px2 - tx2) + jnp.abs(py2 - ty2))

            area_p = (px2 - px1) * (py2 - py1)
            area_t = (tx2 - tx1) * (ty2 - ty1)
            ix1 = jnp.maximum(px1, tx1)
            iy1 = jnp.maximum(py1, ty1)
            ix2 = jnp.minimum(px2, tx2)
            iy2 = jnp.minimum(py2, ty2)
            inter = jnp.where((ix2 > ix1) & (iy2 > iy1),
                              (ix2 - ix1) * (iy2 - iy1), 0.0)
            union = area_p + area_t - inter
            iou = inter / (union + _EPS)
            ex1 = jnp.minimum(px1, tx1)
            ey1 = jnp.minimum(py1, ty1)
            ex2 = jnp.maximum(px2, tx2)
            ey2 = jnp.maximum(py2, ty2)
            area_c = (ex2 - ex1) * (ey2 - ey1)
            giou = iou - (area_c - union) / (area_c + _EPS)
            giou_sum = jnp.sum(1.0 - giou)
            return l1_sum, giou_sum

        l1_0, g_0 = box_losses(0, tgt_ref)    # pos_bbox[..., :4] vs boxes
        l1_1, g_1 = box_losses(4, tgt1_ref)   # pos_bbox[..., 4:] vs boxes_1

        loss_ref[0, 0] = (w_ce * class_sum
                          + w_l1 * l1_0 + w_giou * g_0
                          + w_l11 * l1_1 + w_giou1 * g_1)

    # ------------- string CE on the lane-dense (bt, V*T) logits tile ----------
    x = lp_ref[...].astype(jnp.float32)                                # (bt, L)
    m_row = jnp.max(x, axis=-1, keepdims=True)                         # (bt, 1)
    e = jnp.exp(x - m_row)                                             # <= 1

    # Per-(b, t) exp-sums via a constant 0/1 reduction matrix on the idle MXU:
    # colmap[l, t] = 1 iff (l % T) == t  ->  s[b, t] = sum_v exp(x[b, v, t] - m).
    s = jnp.dot(e, colmap_ref[...], preferred_element_type=jnp.float32)  # (bt, T)

    labels = lab_ref[...]                                              # (bt, T) f32, -1 pad
    valid = labels[:, 0:1] >= 0.0                                      # (bt, 1)

    # Floor guards log(0) if an entire class group underflows vs the row max.
    lse = m_row + jnp.log(jnp.maximum(s, 1e-30))                       # (bt, T)
    lse_sum = jnp.sum(jnp.where(valid, lse, 0.0))

    # Broadcast labels across the V copies of each t (each output element of this
    # dot has exactly one nonzero term, so it is exact), then pick the target
    # logit with a lane-wise compare against vlane[l] = l // T.
    lab_exp = jnp.dot(labels, rowmap_ref[...],
                      preferred_element_type=jnp.float32)              # (bt, L)
    mask = jnp.abs(lab_exp - vlane_ref[...]) < 0.5                     # (bt, L)
    picked_sum = jnp.sum(jnp.where(mask, x, 0.0))

    loss_ref[0, 0] += w_string * (lse_sum - picked_sum)


# --------------------------------------------------------------------------- #
# Wrapper: pallas_call plumbing (only tiny glue ops; the big logits tensor is
# consumed via a free contiguous reshape, no pad / transpose / upcast in HBM)
# --------------------------------------------------------------------------- #
def denoise_loss_pallas(outputs, targets, cfg=None, *, block_batch=None,
                        vmem_limit_bytes=None):
    cfg = cfg or {}
    k_ce = float(cfg.get('k_ce', 1))
    k_l1 = float(cfg.get('k_l1', 5))
    k_giou = float(cfg.get('k_giou', 2))
    k_l11 = float(cfg.get('k_l11', 5))
    k_giou1 = float(cfg.get('k_giou1', 2))
    k_string = float(cfg.get('k_string', 10))

    lp_logits = outputs['LP_dn_logits']            # (B, V, T), kept in model dtype
    B, V, T = lp_logits.shape
    L = V * T
    lp2d = lp_logits.reshape(B, L)                 # contiguous -> lane-dense layout

    lps = targets['LPs'].astype(jnp.float32)       # (B, T), tiny
    pos_logit = outputs['pos_class_logit']         # (B, C)
    neg_logit = outputs['neg_class_logit']         # (B, C)
    C = pos_logit.shape[1]

    pos_bbox = outputs['pos_bbox']                 # (B, 8) = cxcywh | cxcywh
    tgt_box = targets['boxes'][:, 0, :]            # (B, 4) xyxy
    tgt_box1 = targets['boxes_1'][:, 0, :]         # (B, 4) xyxy

    # ---- generation-aware VMEM budget and batch-tile sizing ------------------
    try:
        phys_vmem = int(pltpu.get_tpu_info().vmem_capacity_bytes)
    except Exception:
        phys_vmem = 128 * 1024 * 1024              # v5e / v6e default
    if vmem_limit_bytes is None:
        # v5e/v6e (128 MiB physical) -> 96 MiB scoped; v7x (64 MiB) -> 48 MiB.
        vmem_limit_bytes = min((phys_vmem * 3) // 4, 100 * 1024 * 1024)
    vmem_limit_bytes = int(vmem_limit_bytes)

    itemsize = jnp.dtype(lp_logits.dtype).itemsize
    lanes_pad = ((L + 127) // 128) * 128
    # Physical working set per batch row: double-buffered input tile plus ~4
    # f32 full-tile temporaries (x, exp, select, slack).
    per_b = 2 * lanes_pad * itemsize + 4 * lanes_pad * 4

    if block_batch is None:
        budget = max(2 * 1024 * 1024, vmem_limit_bytes // 2)
        bt = budget // per_b
    else:
        bt = int(block_batch)
    if bt >= B:
        bt = B
    else:
        bt = max(8, (bt // 8) * 8)                 # keep sublane tiling legal
        bt = min(bt, B)
    num_tiles = (B + bt - 1) // bt

    # Labels are tiny -> pad them (with -1 sentinel) so the last ragged tile's
    # validity mask is derived in-kernel; the big logits array is never padded.
    labels = lps
    pad_rows = num_tiles * bt - B
    if pad_rows:
        labels = jnp.pad(labels, ((0, pad_rows), (0, 0)), constant_values=-1.0)

    # Tiny constant helper arrays (trace time): reduction / broadcast matrices.
    l_idx = jnp.arange(L, dtype=jnp.int32)
    t_idx = jnp.arange(T, dtype=jnp.int32)
    colmap = (l_idx[:, None] % T == t_idx[None, :]).astype(jnp.float32)  # (L, T)
    rowmap = jnp.transpose(colmap)                                        # (T, L)
    vlane = (l_idx // T).astype(jnp.float32).reshape(1, L)                # (1, L)

    # Fold every mean normalization into the loss weights at trace time.
    w_string = k_string / float(B * T)
    w_ce = k_ce / float(2 * B)
    w_l1 = k_l1 / float(4 * B)
    w_giou = k_giou / float(B)
    w_l11 = k_l11 / float(4 * B)
    w_giou1 = k_giou1 / float(B)

    kernel = functools.partial(
        denoise_loss_kernel,
        w_string=w_string, w_ce=w_ce, w_l1=w_l1, w_giou=w_giou,
        w_l11=w_l11, w_giou1=w_giou1)

    cost = pl.CostEstimate(
        flops=int(4 * B * L * T + 12 * B * L + 30 * B * C + 60 * B),
        transcendentals=int(B * L + B * T + 4 * B * C),
        bytes_accessed=int(B * L * itemsize
                           + num_tiles * bt * T * 4
                           + 2 * L * T * 4 + L * 4
                           + B * (2 * C + 16) * 4 + 4))

    out = pl.pallas_call(
        kernel,
        out_shape=jax.ShapeDtypeStruct((1, 1), jnp.float32),
        grid=(num_tiles,),
        in_specs=[
            pl.BlockSpec((bt, L), lambda i: (i, 0)),   # LP_dn logits tile (lane-dense)
            pl.BlockSpec((bt, T), lambda i: (i, 0)),   # labels tile (padded, -1 sentinel)
            pl.BlockSpec((L, T), lambda i: (0, 0)),    # colmap (resident)
            pl.BlockSpec((T, L), lambda i: (0, 0)),    # rowmap (resident)
            pl.BlockSpec((1, L), lambda i: (0, 0)),    # vlane  (resident)
            pl.BlockSpec((B, C), lambda i: (0, 0)),    # pos_class_logit
            pl.BlockSpec((B, C), lambda i: (0, 0)),    # neg_class_logit
            pl.BlockSpec((B, 8), lambda i: (0, 0)),    # pos_bbox
            pl.BlockSpec((B, 4), lambda i: (0, 0)),    # targets['boxes']
            pl.BlockSpec((B, 4), lambda i: (0, 0)),    # targets['boxes_1']
        ],
        out_specs=pl.BlockSpec((1, 1), lambda i: (0, 0),
                               memory_space=pltpu.MemorySpace.SMEM),
        compiler_params=pltpu.CompilerParams(
            dimension_semantics=("arbitrary",),
            vmem_limit_bytes=vmem_limit_bytes),
        cost_estimate=cost,
    )(lp2d, labels, colmap, rowmap, vlane,
      pos_logit, neg_logit, pos_bbox, tgt_box, tgt_box1)
    return out[0, 0]


# --------------------------------------------------------------------------- #
# Pure-JAX reference (mirrors the PyTorch forward) for correctness checking
# --------------------------------------------------------------------------- #
def denoise_loss_reference(outputs, targets, cfg=None):
    cfg = cfg or {}
    k_ce = cfg.get('k_ce', 1); k_l1 = cfg.get('k_l1', 5); k_giou = cfg.get('k_giou', 2)
    k_l11 = cfg.get('k_l11', 5); k_giou1 = cfg.get('k_giou1', 2); k_string = cfg.get('k_string', 10)

    def ce(logits, labels):  # logits (N, C), labels (N,)
        logp = jax.nn.log_softmax(logits, axis=-1)
        return -jnp.mean(jnp.take_along_axis(logp, labels[:, None], axis=-1))

    def cxcywh_to_xyxy(b):
        cx, cy, w, h = b[..., 0], b[..., 1], b[..., 2], b[..., 3]
        return jnp.stack([cx - 0.5 * w, cy - 0.5 * h, cx + 0.5 * w, cy + 0.5 * h], axis=-1)

    def giou_loss(p, t):
        px1, py1, px2, py2 = (p[..., i] for i in range(4))
        tx1, ty1, tx2, ty2 = (t[..., i] for i in range(4))
        area_p = (px2 - px1) * (py2 - py1)
        area_t = (tx2 - tx1) * (ty2 - ty1)
        ix1, iy1 = jnp.maximum(px1, tx1), jnp.maximum(py1, ty1)
        ix2, iy2 = jnp.minimum(px2, tx2), jnp.minimum(py2, ty2)
        inter = jnp.where((ix2 > ix1) & (iy2 > iy1), (ix2 - ix1) * (iy2 - iy1), 0.0)
        union = area_p + area_t - inter
        iou = inter / (union + _EPS)
        ex1, ey1 = jnp.minimum(px1, tx1), jnp.minimum(py1, ty1)
        ex2, ey2 = jnp.maximum(px2, tx2), jnp.maximum(py2, ty2)
        area_c = (ex2 - ex1) * (ey2 - ey1)
        giou = iou - (area_c - union) / (area_c + _EPS)
        return jnp.mean(1.0 - giou)

    lp = outputs['LP_dn_logits'].astype(jnp.float32)
    B, V, T = lp.shape
    string_loss = ce(jnp.transpose(lp, (0, 2, 1)).reshape(B * T, V),
                     targets['LPs'].astype(jnp.int32).reshape(B * T))

    pos = outputs['pos_class_logit'].astype(jnp.float32)
    neg = outputs['neg_class_logit'].astype(jnp.float32)
    class_loss = ce(jnp.concatenate([pos, neg], axis=0),
                    jnp.concatenate([jnp.ones((B,), jnp.int32), jnp.zeros((B,), jnp.int32)]))

    pb = outputs['pos_bbox'].astype(jnp.float32)
    p_box = cxcywh_to_xyxy(pb[..., :4])
    p_box1 = cxcywh_to_xyxy(pb[..., 4:])
    tgt = targets['boxes'][:, 0, :].astype(jnp.float32)
    tgt1 = targets['boxes_1'][:, 0, :].astype(jnp.float32)
    p_box_l1 = jnp.mean(jnp.abs(p_box - tgt))
    p_box1_l1 = jnp.mean(jnp.abs(p_box1 - tgt1))
    p_box_giou = giou_loss(p_box, tgt)
    p_box1_giou = giou_loss(p_box1, tgt1)

    return (k_ce * class_loss + k_l1 * p_box_l1 + k_giou * p_box_giou
            + k_l11 * p_box1_l1 + k_giou1 * p_box1_giou + k_string * string_loss)


# --------------------------------------------------------------------------- #
# Demo / correctness check
# --------------------------------------------------------------------------- #
def _make_inputs(key, B, C, T, V, lp_dtype=jnp.float32):
    k1, k2, k3, k4, k5, k6, k7, k8 = jax.random.split(key, 8)
    pos_class_logit = jax.random.normal(k1, (B, C), jnp.float32)
    neg_class_logit = jax.random.normal(k2, (B, C), jnp.float32)
    lp_dn_logits = jax.random.normal(k3, (B, V, T), jnp.float32).astype(lp_dtype)
    lps = jax.random.randint(k4, (B, T), 0, V, jnp.int32)

    # predicted denoised boxes: two cxcywh boxes per sample -> (B, 8)
    cxcy = jax.random.uniform(k5, (B, 4), minval=0.3, maxval=0.7)
    wh = jax.random.uniform(k6, (B, 4), minval=0.1, maxval=0.3)
    pos_bbox = jnp.stack([cxcy[:, 0], cxcy[:, 1], wh[:, 0], wh[:, 1],
                          cxcy[:, 2], cxcy[:, 3], wh[:, 2], wh[:, 3]], axis=-1)

    # target boxes in xyxy, shaped (B, 1, 4) like the PyTorch inputs
    tc = jax.random.uniform(k7, (B, 2, 2), minval=0.3, maxval=0.7)
    tw = jax.random.uniform(k8, (B, 2, 2), minval=0.1, maxval=0.3)
    tgt_xyxy = jnp.concatenate([tc - 0.5 * tw, tc + 0.5 * tw], axis=-1)  # (B, 2, 4)

    outputs = {'LP_dn_logits': lp_dn_logits,
               'pos_class_logit': pos_class_logit,
               'neg_class_logit': neg_class_logit,
               'pos_bbox': pos_bbox}
    targets = {'LPs': lps,
               'boxes': tgt_xyxy[:, 0:1, :],
               'boxes_1': tgt_xyxy[:, 1:2, :]}
    return outputs, targets


if __name__ == "__main__":
    key = jax.random.PRNGKey(0)
    k_a, k_b = jax.random.split(key)

    # Test 1: small f32 inputs, single grid step (block covers full batch).
    outs, tgts = _make_inputs(k_a, B=2, C=3, T=8, V=16)
    loss = jax.block_until_ready(denoise_loss_pallas(outs, tgts))
    ref = float(denoise_loss_reference(outs, tgts))
    assert abs(float(loss) - ref) < 2e-3 + 1.5e-3 * abs(ref), (float(loss), ref)

    # Test 2: bf16 logits, multi-tile grid with a partial (masked) last tile.
    outs2, tgts2 = _make_inputs(k_b, B=11, C=5, T=12, V=40, lp_dtype=jnp.bfloat16)
    loss2 = jax.block_until_ready(denoise_loss_pallas(outs2, tgts2, block_batch=8))
    ref2 = float(denoise_loss_reference(outs2, tgts2))
    assert abs(float(loss2) - ref2) < 2e-3 + 1.5e-3 * abs(ref2), (float(loss2), ref2)

    print("KERNEL_OK")
</pallas_src>

<mosaic_0001>
module attributes {stable_mosaic.version = 11 : i64} {
  func.func @denoise_loss_kernel(%arg0: i32, %arg1: memref<2x128xf32, #tpu.memory_space<vmem>>, %arg2: memref<2x8xf32, #tpu.memory_space<vmem>>, %arg3: memref<128x8xf32, #tpu.memory_space<vmem>>, %arg4: memref<8x128xf32, #tpu.memory_space<vmem>>, %arg5: memref<1x128xf32, #tpu.memory_space<vmem>>, %arg6: memref<2x3xf32, #tpu.memory_space<vmem>>, %arg7: memref<2x3xf32, #tpu.memory_space<vmem>>, %arg8: memref<2x8xf32, #tpu.memory_space<vmem>>, %arg9: memref<2x4xf32, #tpu.memory_space<vmem>>, %arg10: memref<2x4xf32, #tpu.memory_space<vmem>>, %arg11: memref<1x1xf32, #tpu.memory_space<smem>>) attributes {dimension_semantics = [#tpu.dimension_semantics<arbitrary>], iteration_bounds = array<i64: 1>, scalar_prefetch = 0 : i64, scratch_operands = 0 : i64, tpu.core_type = #tpu.core_type<tc>, window_params = [{transform_indices = @transform_0, window_bounds = array<i64: 2, 128>}, {transform_indices = @transform_1, window_bounds = array<i64: 2, 8>}, {pipeline_mode = #tpu.pipeline_mode<synchronous>, transform_indices = @transform_2, window_bounds = array<i64: 128, 8>}, {pipeline_mode = #tpu.pipeline_mode<synchronous>, transform_indices = @transform_3, window_bounds = array<i64: 8, 128>}, {pipeline_mode = #tpu.pipeline_mode<synchronous>, transform_indices = @transform_4, window_bounds = array<i64: 1, 128>}, {pipeline_mode = #tpu.pipeline_mode<synchronous>, transform_indices = @transform_5, window_bounds = array<i64: 2, 3>}, {pipeline_mode = #tpu.pipeline_mode<synchronous>, transform_indices = @transform_6, window_bounds = array<i64: 2, 3>}, {pipeline_mode = #tpu.pipeline_mode<synchronous>, transform_indices = @transform_7, window_bounds = array<i64: 2, 8>}, {pipeline_mode = #tpu.pipeline_mode<synchronous>, transform_indices = @transform_8, window_bounds = array<i64: 2, 4>}, {pipeline_mode = #tpu.pipeline_mode<synchronous>, transform_indices = @transform_9, window_bounds = array<i64: 2, 4>}, {transform_indices = @transform_10, window_bounds = array<i64: 1, 1>}]} {
    %c0_i32 = arith.constant 0 : i32
    %0 = arith.cmpi eq, %arg0, %c0_i32 : i32
    %1 = arith.extui %0 : i1 to i32
    %c0_i32_0 = arith.constant 0 : i32
    %2 = arith.cmpi ne, %1, %c0_i32_0 : i32
    scf.if %2 {
      %c0_24 = arith.constant 0 : index
      %c0_25 = arith.constant 0 : index
      %47 = vector.load %arg6[%c0_24, %c0_25] : memref<2x3xf32, #tpu.memory_space<vmem>>, vector<2x3xf32>
      %cst_26 = arith.constant dense<0xFF800000> : vector<2xf32>
      %48 = vector.multi_reduction <maximumf>, %47, %cst_26 [1] : vector<2x3xf32> to vector<2xf32>
      %49 = vector.shape_cast %48 : vector<2xf32> to vector<2x1xf32>
      %50 = vector.broadcast %49 : vector<2x1xf32> to vector<2x3xf32>
      %51 = arith.subf %47, %50 : vector<2x3xf32>
      %52 = math.exp %51 : vector<2x3xf32>
      %cst_27 = arith.constant dense<0.000000e+00> : vector<2xf32>
      %53 = vector.multi_reduction <add>, %52, %cst_27 [1] : vector<2x3xf32> to vector<2xf32>
      %54 = vector.shape_cast %53 : vector<2xf32> to vector<2x1xf32>
      %55 = math.log %54 : vector<2x1xf32>
      %56 = arith.addf %49, %55 : vector<2x1xf32>
      %57 = tpu.iota {dimensions = array<i32: 1>} : vector<2x3xi32>
      %c1_i32 = arith.constant 1 : i32
      %58 = vector.broadcast %c1_i32 : i32 to vector<2x3xi32>
      %59 = arith.cmpi eq, %57, %58 : vector<2x3xi32>
      %cst_28 = arith.constant 0.000000e+00 : f32
      %60 = vector.broadcast %cst_28 : f32 to vector<2x3xf32>
      %61 = arith.select %59, %47, %60 : vector<2x3xi1>, vector<2x3xf32>
      %cst_29 = arith.constant dense<0.000000e+00> : vector<2xf32>
      %62 = vector.multi_reduction <add>, %61, %cst_29 [1] : vector<2x3xf32> to vector<2xf32>
      %63 = vector.shape_cast %62 : vector<2xf32> to vector<2x1xf32>
      %64 = arith.subf %56, %63 : vector<2x1xf32>
      %65 = vector.shape_cast %64 : vector<2x1xf32> to vector<1x2x1xf32>
      %cst_30 = arith.constant dense<0.000000e+00> : vector<1xf32>
      %66 = vector.multi_reduction <add>, %65, %cst_30 [1, 2] : vector<1x2x1xf32> to vector<1xf32>
      %67 = vector.shape_cast %66 : vector<1xf32> to vector<1x1x1xf32>
      %68 = vector.extract %67[0, 0, 0] : f32 from vector<1x1x1xf32>
      %c0_31 = arith.constant 0 : index
      %c0_32 = arith.constant 0 : index
      %69 = vector.load %arg7[%c0_31, %c0_32] : memref<2x3xf32, #tpu.memory_space<vmem>>, vector<2x3xf32>
      %cst_33 = arith.constant dense<0xFF800000> : vector<2xf32>
      %70 = vector.multi_reduction <maximumf>, %69, %cst_33 [1] : vector<2x3xf32> to vector<2xf32>
      %71 = vector.shape_cast %70 : vector<2xf32> to vector<2x1xf32>
      %72 = vector.broadcast %71 : vector<2x1xf32> to vector<2x3xf32>
      %73 = arith.subf %69, %72 : vector<2x3xf32>
      %74 = math.exp %73 : vector<2x3xf32>
      %cst_34 = arith.constant dense<0.000000e+00> : vector<2xf32>
      %75 = vector.multi_reduction <add>, %74, %cst_34 [1] : vector<2x3xf32> to vector<2xf32>
      %76 = vector.shape_cast %75 : vector<2xf32> to vector<2x1xf32>
      %77 = math.log %76 : vector<2x1xf32>
      %78 = arith.addf %71, %77 : vector<2x1xf32>
      %79 = tpu.iota {dimensions = array<i32: 1>} : vector<2x3xi32>
      %c0_i32_35 = arith.constant 0 : i32
      %80 = vector.broadcast %c0_i32_35 : i32 to vector<2x3xi32>
      %81 = arith.cmpi eq, %79, %80 : vector<2x3xi32>
      %cst_36 = arith.constant 0.000000e+00 : f32
      %82 = vector.broadcast %cst_36 : f32 to vector<2x3xf32>
      %83 = arith.select %81, %69, %82 : vector<2x3xi1>, vector<2x3xf32>
      %cst_37 = arith.constant dense<0.000000e+00> : vector<2xf32>
      %84 = vector.multi_reduction <add>, %83, %cst_37 [1] : vector<2x3xf32> to vector<2xf32>
      %85 = vector.shape_cast %84 : vector<2xf32> to vector<2x1xf32>
      %86 = arith.subf %78, %85 : vector<2x1xf32>
      %87 = vector.shape_cast %86 : vector<2x1xf32> to vector<1x2x1xf32>
      %cst_38 = arith.constant dense<0.000000e+00> : vector<1xf32>
      %88 = vector.multi_reduction <add>, %87, %cst_38 [1, 2] : vector<1x2x1xf32> to vector<1xf32>
      %89 = vector.shape_cast %88 : vector<1xf32> to vector<1x1x1xf32>
      %90 = vector.extract %89[0, 0, 0] : f32 from vector<1x1x1xf32>
      %91 = arith.addf %68, %90 : f32
      %c0_39 = arith.constant 0 : index
      %c0_40 = arith.constant 0 : index
      %92 = vector.load %arg8[%c0_39, %c0_40] : memref<2x8xf32, #tpu.memory_space<vmem>>, vector<2x8xf32>
      %c0_41 = arith.constant 0 : index
      %c0_42 = arith.constant 0 : index
      %93 = vector.load %arg9[%c0_41, %c0_42] : memref<2x4xf32, #tpu.memory_space<vmem>>, vector<2x4xf32>
      %94 = vector.extract_strided_slice %92 {offsets = [0, 0], sizes = [2, 1], strides = [1, 1]} : vector<2x8xf32> to vector<2x1xf32>
      %95 = vector.extract_strided_slice %92 {offsets = [0, 1], sizes = [2, 1], strides = [1, 1]} : vector<2x8xf32> to vector<2x1xf32>
      %96 = vector.extract_strided_slice %92 {offsets = [0, 2], sizes = [2, 1], strides = [1, 1]} : vector<2x8xf32> to vector<2x1xf32>
      %97 = vector.extract_strided_slice %92 {offsets = [0, 3], sizes = [2, 1], strides = [1, 1]} : vector<2x8xf32> to vector<2x1xf32>
      %cst_43 = arith.constant 5.000000e-01 : f32
      %98 = vector.broadcast %cst_43 : f32 to vector<2x1xf32>
      %99 = arith.mulf %98, %96 : vector<2x1xf32>
      %100 = arith.subf %94, %99 : vector<2x1xf32>
      %cst_44 = arith.constant 5.000000e-01 : f32
      %101 = vector.broadcast %cst_44 : f32 to vector<2x1xf32>
      %102 = arith.mulf %101, %97 : vector<2x1xf32>
      %103 = arith.subf %95, %102 : vector<2x1xf32>
      %cst_45 = arith.constant 5.000000e-01 : f32
      %104 = vector.broadcast %cst_45 : f32 to vector<2x1xf32>
      %105 = arith.mulf %104, %96 : vector<2x1xf32>
      %106 = arith.addf %94, %105 : vector<2x1xf32>
      %cst_46 = arith.constant 5.000000e-01 : f32
      %107 = vector.broadcast %cst_46 : f32 to vector<2x1xf32>
      %108 = arith.mulf %107, %97 : vector<2x1xf32>
      %109 = arith.addf %95, %108 : vector<2x1xf32>
      %110 = vector.extract_strided_slice %93 {offsets = [0, 0], sizes = [2, 1], strides = [1, 1]} : vector<2x4xf32> to vector<2x1xf32>
      %111 = vector.extract_strided_slice %93 {offsets = [0, 1], sizes = [2, 1], strides = [1, 1]} : vector<2x4xf32> to vector<2x1xf32>
      %112 = vector.extract_strided_slice %93 {offsets = [0, 2], sizes = [2, 1], strides = [1, 1]} : vector<2x4xf32> to vector<2x1xf32>
      %113 = vector.extract_strided_slice %93 {offsets = [0, 3], sizes = [2, 1], strides = [1, 1]} : vector<2x4xf32> to vector<2x1xf32>
      %114 = arith.subf %100, %110 : vector<2x1xf32>
      %115 = math.absf %114 : vector<2x1xf32>
      %116 = arith.subf %103, %111 : vector<2x1xf32>
      %117 = math.absf %116 : vector<2x1xf32>
      %118 = arith.addf %115, %117 : vector<2x1xf32>
      %119 = arith.subf %106, %112 : vector<2x1xf32>
      %120 = math.absf %119 : vector<2x1xf32>
      %121 = arith.addf %118, %120 : vector<2x1xf32>
      %122 = arith.subf %109, %113 : vector<2x1xf32>
      %123 = math.absf %122 : vector<2x1xf32>
      %124 = arith.addf %121, %123 : vector<2x1xf32>
      %125 = vector.shape_cast %124 : vector<2x1xf32> to vector<1x2x1xf32>
      %cst_47 = arith.constant dense<0.000000e+00> : vector<1xf32>
      %126 = vector.multi_reduction <add>, %125, %cst_47 [1, 2] : vector<1x2x1xf32> to vector<1xf32>
      %127 = vector.shape_cast %126 : vector<1xf32> to vector<1x1x1xf32>
      %128 = vector.extract %127[0, 0, 0] : f32 from vector<1x1x1xf32>
      %129 = arith.subf %106, %100 : vector<2x1xf32>
      %130 = arith.subf %109, %103 : vector<2x1xf32>
      %131 = arith.mulf %129, %130 : vector<2x1xf32>
      %132 = arith.subf %112, %110 : vector<2x1xf32>
      %133 = arith.subf %113, %111 : vector<2x1xf32>
      %134 = arith.mulf %132, %133 : vector<2x1xf32>
      %135 = arith.maximumf %100, %110 : vector<2x1xf32>
      %136 = arith.maximumf %103, %111 : vector<2x1xf32>
      %137 = arith.minimumf %106, %112 : vector<2x1xf32>
      %138 = arith.minimumf %109, %113 : vector<2x1xf32>
      %139 = arith.cmpf ogt, %137, %135 : vector<2x1xf32>
      %140 = arith.cmpf ogt, %138, %136 : vector<2x1xf32>
      %141 = arith.andi %139, %140 : vector<2x1xi1>
      %142 = arith.subf %137, %135 : vector<2x1xf32>
      %143 = arith.subf %138, %136 : vector<2x1xf32>
      %144 = arith.mulf %142, %143 : vector<2x1xf32>
      %cst_48 = arith.constant 0.000000e+00 : f32
      %145 = vector.broadcast %cst_48 : f32 to vector<2x1xf32>
      %146 = arith.select %141, %144, %145 : vector<2x1xi1>, vector<2x1xf32>
      %147 = arith.addf %131, %134 : vector<2x1xf32>
      %148 = arith.subf %147, %146 : vector<2x1xf32>
      %cst_49 = arith.constant 1.000000e-07 : f32
      %149 = vector.broadcast %cst_49 : f32 to vector<2x1xf32>
      %150 = arith.addf %148, %149 : vector<2x1xf32>
      %151 = arith.divf %146, %150 : vector<2x1xf32>
      %152 = arith.minimumf %100, %110 : vector<2x1xf32>
      %153 = arith.minimumf %103, %111 : vector<2x1xf32>
      %154 = arith.maximumf %106, %112 : vector<2x1xf32>
      %155 = arith.maximumf %109, %113 : vector<2x1xf32>
      %156 = arith.subf %154, %152 : vector<2x1xf32>
      %157 = arith.subf %155, %153 : vector<2x1xf32>
      %158 = arith.mulf %156, %157 : vector<2x1xf32>
      %159 = arith.subf %158, %148 : vector<2x1xf32>
      %cst_50 = arith.constant 1.000000e-07 : f32
      %160 = vector.broadcast %cst_50 : f32 to vector<2x1xf32>
      %161 = arith.addf %158, %160 : vector<2x1xf32>
      %162 = arith.divf %159, %161 : vector<2x1xf32>
      %163 = arith.subf %151, %162 : vector<2x1xf32>
      %cst_51 = arith.constant 1.000000e+00 : f32
      %164 = vector.broadcast %cst_51 : f32 to vector<2x1xf32>
      %165 = arith.subf %164, %163 : vector<2x1xf32>
      %166 = vector.shape_cast %165 : vector<2x1xf32> to vector<1x2x1xf32>
      %cst_52 = arith.constant dense<0.000000e+00> : vector<1xf32>
      %167 = vector.multi_reduction <add>, %166, %cst_52 [1, 2] : vector<1x2x1xf32> to vector<1xf32>
      %168 = vector.shape_cast %167 : vector<1xf32> to vector<1x1x1xf32>
      %169 = vector.extract %168[0, 0, 0] : f32 from vector<1x1x1xf32>
      %c0_53 = arith.constant 0 : index
      %c0_54 = arith.constant 0 : index
      %170 = vector.load %arg10[%c0_53, %c0_54] : memref<2x4xf32, #tpu.memory_space<vmem>>, vector<2x4xf32>
      %171 = vector.extract_strided_slice %92 {offsets = [0, 4], sizes = [2, 1], strides = [1, 1]} : vector<2x8xf32> to vector<2x1xf32>
      %172 = vector.extract_strided_slice %92 {offsets = [0, 5], sizes = [2, 1], strides = [1, 1]} : vector<2x8xf32> to vector<2x1xf32>
      %173 = vector.extract_strided_slice %92 {offsets = [0, 6], sizes = [2, 1], strides = [1, 1]} : vector<2x8xf32> to vector<2x1xf32>
      %174 = vector.extract_strided_slice %92 {offsets = [0, 7], sizes = [2, 1], strides = [1, 1]} : vector<2x8xf32> to vector<2x1xf32>
      %cst_55 = arith.constant 5.000000e-01 : f32
      %175 = vector.broadcast %cst_55 : f32 to vector<2x1xf32>
      %176 = arith.mulf %175, %173 : vector<2x1xf32>
      %177 = arith.subf %171, %176 : vector<2x1xf32>
      %cst_56 = arith.constant 5.000000e-01 : f32
      %178 = vector.broadcast %cst_56 : f32 to vector<2x1xf32>
      %179 = arith.mulf %178, %174 : vector<2x1xf32>
      %180 = arith.subf %172, %179 : vector<2x1xf32>
      %cst_57 = arith.constant 5.000000e-01 : f32
      %181 = vector.broadcast %cst_57 : f32 to vector<2x1xf32>
      %182 = arith.mulf %181, %173 : vector<2x1xf32>
      %183 = arith.addf %171, %182 : vector<2x1xf32>
      %cst_58 = arith.constant 5.000000e-01 : f32
      %184 = vector.broadcast %cst_58 : f32 to vector<2x1xf32>
      %185 = arith.mulf %184, %174 : vector<2x1xf32>
      %186 = arith.addf %172, %185 : vector<2x1xf32>
      %187 = vector.extract_strided_slice %170 {offsets = [0, 0], sizes = [2, 1], strides = [1, 1]} : vector<2x4xf32> to vector<2x1xf32>
      %188 = vector.extract_strided_slice %170 {offsets = [0, 1], sizes = [2, 1], strides = [1, 1]} : vector<2x4xf32> to vector<2x1xf32>
      %189 = vector.extract_strided_slice %170 {offsets = [0, 2], sizes = [2, 1], strides = [1, 1]} : vector<2x4xf32> to vector<2x1xf32>
      %190 = vector.extract_strided_slice %170 {offsets = [0, 3], sizes = [2, 1], strides = [1, 1]} : vector<2x4xf32> to vector<2x1xf32>
      %191 = arith.subf %177, %187 : vector<2x1xf32>
      %192 = math.absf %191 : vector<2x1xf32>
      %193 = arith.subf %180, %188 : vector<2x1xf32>
      %194 = math.absf %193 : vector<2x1xf32>
      %195 = arith.addf %192, %194 : vector<2x1xf32>
      %196 = arith.subf %183, %189 : vector<2x1xf32>
      %197 = math.absf %196 : vector<2x1xf32>
      %198 = arith.addf %195, %197 : vector<2x1xf32>
      %199 = arith.subf %186, %190 : vector<2x1xf32>
      %200 = math.absf %199 : vector<2x1xf32>
      %201 = arith.addf %198, %200 : vector<2x1xf32>
      %202 = vector.shape_cast %201 : vector<2x1xf32> to vector<1x2x1xf32>
      %cst_59 = arith.constant dense<0.000000e+00> : vector<1xf32>
      %203 = vector.multi_reduction <add>, %202, %cst_59 [1, 2] : vector<1x2x1xf32> to vector<1xf32>
      %204 = vector.shape_cast %203 : vector<1xf32> to vector<1x1x1xf32>
      %205 = vector.extract %204[0, 0, 0] : f32 from vector<1x1x1xf32>
      %206 = arith.subf %183, %177 : vector<2x1xf32>
      %207 = arith.subf %186, %180 : vector<2x1xf32>
      %208 = arith.mulf %206, %207 : vector<2x1xf32>
      %209 = arith.subf %189, %187 : vector<2x1xf32>
      %210 = arith.subf %190, %188 : vector<2x1xf32>
      %211 = arith.mulf %209, %210 : vector<2x1xf32>
      %212 = arith.maximumf %177, %187 : vector<2x1xf32>
      %213 = arith.maximumf %180, %188 : vector<2x1xf32>
      %214 = arith.minimumf %183, %189 : vector<2x1xf32>
      %215 = arith.minimumf %186, %190 : vector<2x1xf32>
      %216 = arith.cmpf ogt, %214, %212 : vector<2x1xf32>
      %217 = arith.cmpf ogt, %215, %213 : vector<2x1xf32>
      %218 = arith.andi %216, %217 : vector<2x1xi1>
      %219 = arith.subf %214, %212 : vector<2x1xf32>
      %220 = arith.subf %215, %213 : vector<2x1xf32>
      %221 = arith.mulf %219, %220 : vector<2x1xf32>
      %cst_60 = arith.constant 0.000000e+00 : f32
      %222 = vector.broadcast %cst_60 : f32 to vector<2x1xf32>
      %223 = arith.select %218, %221, %222 : vector<2x1xi1>, vector<2x1xf32>
      %224 = arith.addf %208, %211 : vector<2x1xf32>
      %225 = arith.subf %224, %223 : vector<2x1xf32>
      %cst_61 = arith.constant 1.000000e-07 : f32
      %226 = vector.broadcast %cst_61 : f32 to vector<2x1xf32>
      %227 = arith.addf %225, %226 : vector<2x1xf32>
      %228 = arith.divf %223, %227 : vector<2x1xf32>
      %229 = arith.minimumf %177, %187 : vector<2x1xf32>
      %230 = arith.minimumf %180, %188 : vector<2x1xf32>
      %231 = arith.maximumf %183, %189 : vector<2x1xf32>
      %232 = arith.maximumf %186, %190 : vector<2x1xf32>
      %233 = arith.subf %231, %229 : vector<2x1xf32>
      %234 = arith.subf %232, %230 : vector<2x1xf32>
      %235 = arith.mulf %233, %234 : vector<2x1xf32>
      %236 = arith.subf %235, %225 : vector<2x1xf32>
      %cst_62 = arith.constant 1.000000e-07 : f32
      %237 = vector.broadcast %cst_62 : f32 to vector<2x1xf32>
      %238 = arith.addf %235, %237 : vector<2x1xf32>
      %239 = arith.divf %236, %238 : vector<2x1xf32>
      %240 = arith.subf %228, %239 : vector<2x1xf32>
      %cst_63 = arith.constant 1.000000e+00 : f32
      %241 = vector.broadcast %cst_63 : f32 to vector<2x1xf32>
      %242 = arith.subf %241, %240 : vector<2x1xf32>
      %243 = vector.shape_cast %242 : vector<2x1xf32> to vector<1x2x1xf32>
      %cst_64 = arith.constant dense<0.000000e+00> : vector<1xf32>
      %244 = vector.multi_reduction <add>, %243, %cst_64 [1, 2] : vector<1x2x1xf32> to vector<1xf32>
      %245 = vector.shape_cast %244 : vector<1xf32> to vector<1x1x1xf32>
      %246 = vector.extract %245[0, 0, 0] : f32 from vector<1x1x1xf32>
      %cst_65 = arith.constant 2.500000e-01 : f32
      %247 = arith.mulf %cst_65, %91 : f32
      %cst_66 = arith.constant 6.250000e-01 : f32
      %248 = arith.mulf %cst_66, %128 : f32
      %249 = arith.addf %247, %248 : f32
      %cst_67 = arith.constant 1.000000e+00 : f32
      %250 = arith.mulf %cst_67, %169 : f32
      %251 = arith.addf %249, %250 : f32
      %cst_68 = arith.constant 6.250000e-01 : f32
      %252 = arith.mulf %cst_68, %205 : f32
      %253 = arith.addf %251, %252 : f32
      %cst_69 = arith.constant 1.000000e+00 : f32
      %254 = arith.mulf %cst_69, %246 : f32
      %255 = arith.addf %253, %254 : f32
      %c0_70 = arith.constant 0 : index
      %c0_71 = arith.constant 0 : index
      %256 = memref.load %arg11[%c0_70, %c0_71] : memref<1x1xf32, #tpu.memory_space<smem>>
      memref.store %255, %arg11[%c0_70, %c0_71] : memref<1x1xf32, #tpu.memory_space<smem>>
    } else {
    }
    %c0 = arith.constant 0 : index
    %c0_1 = arith.constant 0 : index
    %3 = vector.load %arg1[%c0, %c0_1] : memref<2x128xf32, #tpu.memory_space<vmem>>, vector<2x128xf32>
    %cst = arith.constant dense<0xFF800000> : vector<2xf32>
    %4 = vector.multi_reduction <maximumf>, %3, %cst [1] : vector<2x128xf32> to vector<2xf32>
    %5 = vector.shape_cast %4 : vector<2xf32> to vector<2x1xf32>
    %6 = vector.broadcast %5 : vector<2x1xf32> to vector<2x128xf32>
    %7 = arith.subf %3, %6 : vector<2x128xf32>
    %8 = math.exp %7 : vector<2x128xf32>
    %c0_2 = arith.constant 0 : index
    %c0_3 = arith.constant 0 : index
    %9 = vector.load %arg3[%c0_2, %c0_3] : memref<128x8xf32, #tpu.memory_space<vmem>>, vector<128x8xf32>
    %cst_4 = arith.constant dense<0.000000e+00> : vector<2x8xf32>
    %10 = tpu.matmul %8, %9, %cst_4 {dimension_numbers = #tpu.dot_dimension_numbers<[1], [0], [0], [1], [0, 0, 1, 1], [], []>} : vector<2x128xf32>, vector<128x8xf32>, vector<2x8xf32> -> vector<2x8xf32>
    %c0_5 = arith.constant 0 : index
    %c0_6 = arith.constant 0 : index
    %11 = vector.load %arg2[%c0_5, %c0_6] : memref<2x8xf32, #tpu.memory_space<vmem>>, vector<2x8xf32>
    %12 = vector.extract_strided_slice %11 {offsets = [0, 0], sizes = [2, 1], strides = [1, 1]} : vector<2x8xf32> to vector<2x1xf32>
    %cst_7 = arith.constant 0.000000e+00 : f32
    %13 = vector.broadcast %cst_7 : f32 to vector<2x1xf32>
    %14 = arith.cmpf oge, %12, %13 : vector<2x1xf32>
    %cst_8 = arith.constant 1.000000e-30 : f32
    %15 = vector.broadcast %cst_8 : f32 to vector<2x8xf32>
    %16 = arith.maximumf %10, %15 : vector<2x8xf32>
    %17 = math.log %16 : vector<2x8xf32>
    %18 = vector.broadcast %5 : vector<2x1xf32> to vector<2x8xf32>
    %19 = arith.addf %18, %17 : vector<2x8xf32>
    %cst_9 = arith.constant 0.000000e+00 : f32
    %20 = vector.shape_cast %14 : vector<2x1xi1> to vector<2x1xi1>
    %21 = vector.broadcast %20 : vector<2x1xi1> to vector<2x8xi1>
    %22 = vector.broadcast %cst_9 : f32 to vector<2x8xf32>
    %23 = arith.select %21, %19, %22 : vector<2x8xi1>, vector<2x8xf32>
    %24 = vector.shape_cast %23 : vector<2x8xf32> to vector<1x2x8xf32>
    %cst_10 = arith.constant dense<0.000000e+00> : vector<1xf32>
    %25 = vector.multi_reduction <add>, %24, %cst_10 [1, 2] : vector<1x2x8xf32> to vector<1xf32>
    %26 = vector.shape_cast %25 : vector<1xf32> to vector<1x1x1xf32>
    %27 = vector.extract %26[0, 0, 0] : f32 from vector<1x1x1xf32>
    %c0_11 = arith.constant 0 : index
    %c0_12 = arith.constant 0 : index
    %28 = vector.load %arg4[%c0_11, %c0_12] : memref<8x128xf32, #tpu.memory_space<vmem>>, vector<8x128xf32>
    %cst_13 = arith.constant dense<0.000000e+00> : vector<2x128xf32>
    %29 = tpu.matmul %11, %28, %cst_13 {dimension_numbers = #tpu.dot_dimension_numbers<[1], [0], [0], [1], [0, 0, 1, 1], [], []>} : vector<2x8xf32>, vector<8x128xf32>, vector<2x128xf32> -> vector<2x128xf32>
    %c0_14 = arith.constant 0 : index
    %c0_15 = arith.constant 0 : index
    %30 = vector.load %arg5[%c0_14, %c0_15] : memref<1x128xf32, #tpu.memory_space<vmem>>, vector<1x128xf32>
    %31 = vector.broadcast %30 : vector<1x128xf32> to vector<2x128xf32>
    %32 = arith.subf %29, %31 : vector<2x128xf32>
    %33 = math.absf %32 : vector<2x128xf32>
    %cst_16 = arith.constant 5.000000e-01 : f32
    %34 = vector.broadcast %cst_16 : f32 to vector<2x128xf32>
    %35 = arith.cmpf olt, %33, %34 : vector<2x128xf32>
    %cst_17 = arith.constant 0.000000e+00 : f32
    %36 = vector.broadcast %cst_17 : f32 to vector<2x128xf32>
    %37 = arith.select %35, %3, %36 : vector<2x128xi1>, vector<2x128xf32>
    %38 = vector.shape_cast %37 : vector<2x128xf32> to vector<1x2x128xf32>
    %cst_18 = arith.constant dense<0.000000e+00> : vector<1xf32>
    %39 = vector.multi_reduction <add>, %38, %cst_18 [1, 2] : vector<1x2x128xf32> to vector<1xf32>
    %40 = vector.shape_cast %39 : vector<1xf32> to vector<1x1x1xf32>
    %41 = vector.extract %40[0, 0, 0] : f32 from vector<1x1x1xf32>
    %c0_19 = arith.constant 0 : index
    %c0_20 = arith.constant 0 : index
    %42 = memref.load %arg11[%c0_19, %c0_20] : memref<1x1xf32, #tpu.memory_space<smem>>
    %43 = arith.subf %27, %41 : f32
    %cst_21 = arith.constant 6.250000e-01 : f32
    %44 = arith.mulf %cst_21, %43 : f32
    %45 = arith.addf %42, %44 : f32
    %c0_22 = arith.constant 0 : index
    %c0_23 = arith.constant 0 : index
    %46 = memref.load %arg11[%c0_22, %c0_23] : memref<1x1xf32, #tpu.memory_space<smem>>
    memref.store %45, %arg11[%c0_22, %c0_23] : memref<1x1xf32, #tpu.memory_space<smem>>
    return
  }
  func.func @transform_0(%arg0: i32) -> (i32, i32) {
    %c0_i32 = arith.constant 0 : i32
    %c0_i32_0 = arith.constant 0 : i32
    return %arg0, %c0_i32 : i32, i32
  }
  func.func @transform_1(%arg0: i32) -> (i32, i32) {
    %c0_i32 = arith.constant 0 : i32
    %c0_i32_0 = arith.constant 0 : i32
    return %arg0, %c0_i32 : i32, i32
  }
  func.func @transform_2(%arg0: i32) -> (i32, i32) {
    %c0_i32 = arith.constant 0 : i32
    %c0_i32_0 = arith.constant 0 : i32
    %c0_i32_1 = arith.constant 0 : i32
    return %c0_i32, %c0_i32_0 : i32, i32
  }
  func.func @transform_3(%arg0: i32) -> (i32, i32) {
    %c0_i32 = arith.constant 0 : i32
    %c0_i32_0 = arith.constant 0 : i32
    %c0_i32_1 = arith.constant 0 : i32
    return %c0_i32, %c0_i32_0 : i32, i32
  }
  func.func @transform_4(%arg0: i32) -> (i32, i32) {
    %c0_i32 = arith.constant 0 : i32
    %c0_i32_0 = arith.constant 0 : i32
    %c0_i32_1 = arith.constant 0 : i32
    return %c0_i32, %c0_i32_0 : i32, i32
  }
  func.func @transform_5(%arg0: i32) -> (i32, i32) {
    %c0_i32 = arith.constant 0 : i32
    %c0_i32_0 = arith.constant 0 : i32
    %c0_i32_1 = arith.constant 0 : i32
    return %c0_i32, %c0_i32_0 : i32, i32
  }
  func.func @transform_6(%arg0: i32) -> (i32, i32) {
    %c0_i32 = arith.constant 0 : i32
    %c0_i32_0 = arith.constant 0 : i32
    %c0_i32_1 = arith.constant 0 : i32
    return %c0_i32, %c0_i32_0 : i32, i32
  }
  func.func @transform_7(%arg0: i32) -> (i32, i32) {
    %c0_i32 = arith.constant 0 : i32
    %c0_i32_0 = arith.constant 0 : i32
    %c0_i32_1 = arith.constant 0 : i32
    return %c0_i32, %c0_i32_0 : i32, i32
  }
  func.func @transform_8(%arg0: i32) -> (i32, i32) {
    %c0_i32 = arith.constant 0 : i32
    %c0_i32_0 = arith.constant 0 : i32
    %c0_i32_1 = arith.constant 0 : i32
    return %c0_i32, %c0_i32_0 : i32, i32
  }
  func.func @transform_9(%arg0: i32) -> (i32, i32) {
    %c0_i32 = arith.constant 0 : i32
    %c0_i32_0 = arith.constant 0 : i32
    %c0_i32_1 = arith.constant 0 : i32
    return %c0_i32, %c0_i32_0 : i32, i32
  }
  func.func @transform_10(%arg0: i32) -> (i32, i32) {
    %c0_i32 = arith.constant 0 : i32
    %c0_i32_0 = arith.constant 0 : i32
    %c0_i32_1 = arith.constant 0 : i32
    return %c0_i32, %c0_i32_0 : i32, i32
  }
}

</mosaic_0001>

<bundles_post_ra>
// kernel: tpu_custom_call.1
= control target key start
LH: loop header
LB: loop body
LE: loop exit
PB: predicated region body
PF: predicated region fallthrough
CT: control target
= control target key end

     0   :  { %vm309_vm0 = vcmask 1041408   ;;  %s658_s17 = smov 2   ;;  %v659_v6 = vmov 0.0   ;;  %s660_s22 = smov 126   ;;  %s975_s0 = inlined_call_operand.vmem [shape: f32[2,128], index: 0, kind: input, shape index: {}]   ;;  %s976_s1 = inlined_call_operand.vmem [shape: f32[2,8], index: 1, kind: input, shape index: {}]   ;;  %s977_s2 = inlined_call_operand.vmem [shape: f32[128,8], index: 2, kind: input, shape index: {}]   ;;  %s978_s3 = inlined_call_operand.vmem [shape: f32[8,128], index: 3, kind: input, shape index: {}]   ;;  %s979_s4 = inlined_call_operand.vmem [shape: f32[1,128], index: 4, kind: input, shape index: {}]   ;;  %s980_s5 = inlined_call_operand.vmem [shape: f32[2,3], index: 5, kind: input, shape index: {}]   ;;  %s981_s6 = inlined_call_operand.vmem [shape: f32[2,3], index: 6, kind: input, shape index: {}]   ;;  %s982_s7 = inlined_call_operand.vmem [shape: f32[2,8], index: 7, kind: input, shape index: {}]   ;;  %s983_s8 = inlined_call_operand.vmem [shape: f32[2,4], index: 8, kind: input, shape index: {}]   ;;  %s984_s9 = inlined_call_operand.vmem [shape: f32[2,4], index: 9, kind: input, shape index: {}]   ;;  %s985_s10 = inlined_call_operand.hbm [shape: f32[1,1], index: 10, kind: output, shape index: {}]  }
   0x1   :  { %v725_v0 = vld [vmem:[%s983_s8] sm:$0x3]  ;;  %v331_v5 = vld [vmem:[%s977_s2 + $0x78] sm:$0xff]  ;;  %561 = vmatprep.subr.mxu0 %v659_v6  ;;  %v330_v7 = vld [vmem:[%s977_s2 + $0x70] sm:$0xff]  ;;  %596 = vmatprep.subr.mxu1 %v659_v6 }
   0x2   :  { %v730_v1 = vld [vmem:[%s975_s0] sm:$0x3]  ;;  %147 = vrot.lane.b32.xlu1 %v725_v0, %s658_s17  ;;  %562 = vmatpush3.msra.mxu0 %v331_v5 }
   0x3   :  { %v310_v2 = vsel %vm309_vm0, %v730_v1, -inf  ;;  %v739_v3 = vld [vmem:[%s982_s7] sm:$0x3] }
   0x4   :  { %311 = vmax.xlane.f32.xlu0 %v310_v2  ;;  %v105_v4 = vmul.f32 0.5, %v739_v3 }
   0x6   :  { %107 = vrot.lane.b32.xlu1 %v105_v4, %s660_s22 }
   0x7   :  { %15 = vsyncpa [#allocation3], 0  ;;  %v752_v8 = vld [vmem:[%s984_s9] sm:$0x3]  ;;  %563 = vmatprep.subr.mxu0 %v659_v6  ;;  %v329_v9 = vld [vmem:[%s977_s2 + $0x68] sm:$0xff]  ;;  %s661_s28 = smov 4  }
   0x8   :  { %564 = vmatpush3.msra.mxu0 %v330_v7  ;;  %v328_v10 = vld [vmem:[%s977_s2 + $0x60] sm:$0xff]  ;;  %v327_v11 = vld [vmem:[%s977_s2 + $0x58] sm:$0xff]  ;;  %v326_v12 = vld [vmem:[%s977_s2 + $0x50] sm:$0xff]  ;;  %v662_v16 = vmov 0   ;;  %vm663_vm1 = vmmov 0   ;;  %vm41_vm2 = vcmask 17408  }
   0x9   :  { %565 = vmatprep.subr.mxu0 %v659_v6  ;;  %v325_v13 = vld [vmem:[%s977_s2 + $0x48] sm:$0xff]  ;;  %v324_v14 = vld [vmem:[%s977_s2 + $0x40] sm:$0xff]  ;;  %v323_v15 = vld [vmem:[%s977_s2 + $0x38] sm:$0xff]  ;;  %626 = vset.pattern.permute.xlu1 %v662_v16  ;;  %vm426_vm4 = vcmask 64512   ;;  %vm62_vm11 = vcmask 1024   ;;  %vm414_vm15 = vcmask 58368  }
   0xa   :  { %206 = vrot.lane.b32.xlu1 %v752_v8, %s661_s28  ;;  %566 = vmatpush3.msra.mxu0 %v329_v9  ;;  %v322_v17 = vld [vmem:[%s977_s2 + $0x30] sm:$0xff]  ;;  %v321_v18 = vld [vmem:[%s977_s2 + $0x28] sm:$0xff]  ;;  %v320_v19 = vld [vmem:[%s977_s2 + $0x20] sm:$0xff]  ;;  %s666_s11 = smov [#allocation2]  }
   0xb   :  { %567 = vmatprep.subr.mxu0 %v659_v6  ;;  %627 = vset.pattern.permute.xlu0 %v662_v16  ;;  %v319_v20 = vld [vmem:[%s977_s2 + $0x18] sm:$0xff]  ;;  %v318_v21 = vld [vmem:[%s977_s2 + $0x10] sm:$0xff]  ;;  %v317_v22 = vld [vmem:[%s977_s2 + $0x8] sm:$0xff] }
   0xc   :  { %568 = vmatpush3.msra.mxu0 %v328_v10  ;;  %593 = vmatprep.mubr.msk.f32.mxu0 %vm663_vm1, %v659_v6  ;;  %v316_v23 = vld [vmem:[%s977_s2] sm:$0xff]  ;;  %s664_s2 = smov 127   ;;  %v54_v10 = vlaneseq }
   0xd   :  { %569 = vmatprep.subr.mxu0 %v659_v6  ;;  %598 = vmatprep.mubr.msk.f32.mxu1 %vm663_vm1, %v659_v6  ;;  %v804_v24 = vld [vmem:[%s980_s5] sm:$0x3] }
   0xe   :  { %570 = vmatpush3.msra.mxu0 %v327_v11  ;;  %v42_v25 = vsel %vm41_vm2, %v804_v24, -inf  ;;  %v811_v26 = vld [vmem:[%s981_s6] sm:$0x3] }
   0xf   :  { %571 = vmatprep.subr.mxu0 %v659_v6  ;;  %v74_v27 = vsel %vm41_vm2, %v811_v26, -inf  ;;  %v425_v53 = vld [vmem:[%s978_s3] sm:$0xff] }
  0x10   :  { %572 = vmatpush3.msra.mxu0 %v326_v12  ;;  %v402_v54 = vld [vmem:[%s976_s1] sm:$0x3]  ;;  %597 = vmatpush3.msra.mxu1 %v425_v53  ;;  %v55_v12 = vand.u32 127, %v54_v10  ;;  %s665_s1 = smov 124  }
  0x11   :  { %573 = vmatprep.subr.mxu0 %v659_v6  ;;  %599 = vmatmul.mubr.msk.f32.vlgmr.msra.gmra.mxu1 %vm426_vm4, %v402_v54  ;;  %vm403_vm7 = vcmp.ge.f32.partialorder %v402_v54, 0.0 }
  0x12   :  { %574 = vmatpush3.msra.mxu0 %v325_v13  ;;  %vm86_vm5 = vcmp.eq.s32.totalorder %v55_v12, 0  ;;  %vm56_vm8 = vcmp.eq.s32.totalorder %v55_v12, 1 }
  0x13   :  { %575 = vmatprep.subr.mxu0 %v659_v6  ;;  %v87_v13 = vsel %vm86_vm5, %v811_v26, 0.0 }
  0x14   :  { %576 = vmatpush3.msra.mxu0 %v324_v14  ;;  %v88_v14 = vsel %vm41_vm2, %v87_v13, 0.0 }
  0x15   :  { %577 = vmatprep.subr.mxu0 %v659_v6 }
  0x16   :  { %578 = vmatpush3.msra.mxu0 %v323_v15 }
  0x17   :  { %579 = vmatprep.subr.mxu0 %v659_v6 }
  0x18   :  { %580 = vmatpush3.msra.mxu0 %v322_v17 }
  0x19   :  { %581 = vmatprep.subr.mxu0 %v659_v6 }
  0x1a   :  { %216 = vrot.lane.b32.xlu0 %v752_v8, %s658_s17  ;;  %582 = vmatpush3.msra.mxu0 %v321_v18 }
  0x1b   :  { %583 = vmatprep.subr.mxu0 %v659_v6 }
  0x1c   :  { %584 = vmatpush3.msra.mxu0 %v320_v19 }
  0x1d   :  { %585 = vmatprep.subr.mxu0 %v659_v6 }
  0x1e   :  { %586 = vmatpush3.msra.mxu0 %v319_v20 }
  0x1f   :  { %587 = vmatprep.subr.mxu0 %v659_v6 }
  0x20   :  { %588 = vmatpush3.msra.mxu0 %v318_v21  ;;  %v408_v21 = vsel %vm403_vm7, 1, %v662_v16 }
  0x21   :  { %589 = vmatprep.subr.mxu0 %v659_v6 }
  0x22   :  { %590 = vmatpush3.msra.mxu0 %v317_v22  ;;  %v57_v22 = vsel %vm56_vm8, %v804_v24, 0.0 }
  0x23   :  { %591 = vmatprep.subr.mxu0 %v659_v6 }
  0x24   :  { %592 = vmatpush3.msra.mxu0 %v316_v23 }
  0x2e   :  { %43 = vmax.xlane.f32.xlu1 %v42_v25  ;;  %v58_v25 = vsel %vm41_vm2, %v57_v22, 0.0 }
  0x39   :  { %75 = vmax.xlane.f32.xlu0 %v74_v27 }
  0x74   :  { %v148_v28 = vpop.permute.xlu1 %147 }
  0x75   :  { %v816_v29 = vsub.f32 %v725_v0, %v148_v28 }
  0x77   :  { %152 = vrot.lane.b32.xlu0 %v816_v29, %s664_s2 }
  0x78   :  { %v108_v30 = vpop.permute.xlu1 %107 }
  0x79   :  { %v821_v31 = vsub.f32 %v739_v3, %v108_v30  ;;  %v834_v40 = vadd.f32 %v108_v30, %v739_v3 }
  0x7b   :  { %v844_v42 = vsub.f32 %v834_v40, %v821_v31  ;;  %v894_v2 = vmax.f32 %v821_v31, %v725_v0  ;;  %v180_v6 = vmin.f32 %v821_v31, %v725_v0 }
  0x7c   :  { %v207_v32 = vpop.permute.xlu1 %206 }
  0x7d   :  { %v209_v33 = vsub.f32 %v821_v31, %v207_v32  ;;  %v838_v41 = vmax.f32 %v821_v31, %v207_v32  ;;  %v271_v46 = vmin.f32 %v821_v31, %v207_v32 }
  0x7f   :  { %v824_v34 = vand.u32 2147483647, %v209_v33  ;;  %v112_v33 = vsub.f32 %v821_v31, %v725_v0 }
  0x81   :  { %212 = vrot.lane.b32.xlu0 %v824_v34, %s664_s2 }
  0x8d   :  { %v828_v35 = vpop.xlane.xlu0 %311 }
  0x8e   :  { %v313_v36 = vsub.f32 %v730_v1, %v828_v35 }
  0x90   :  { %v314_v37 = vmul.f32 1.442695, %v313_v36  ;;  %v936_v36 = vand.u32 2147483647, %v112_v33 }
  0x91   :  { %v217_v38 = vpop.permute.xlu0 %216 }
  0x92   :  { %628 = vpow2.f32 %v314_v37  ;;  %v241_v39 = vsub.f32 %v752_v8, %v217_v38  ;;  %v847_v43 = vmin.f32 %v834_v40, %v217_v38  ;;  %v272_v47 = vmax.f32 %v834_v40, %v217_v38 }
  0x93   :  { %v219_v50 = vsub.f32 %v834_v40, %v217_v38 }
  0x94   :  { %243 = vrot.lane.b32.xlu1 %v241_v39, %s664_s2  ;;  %vm249_vm3 = vcmp.gt.f32.partialorder %v847_v43, %v838_v41  ;;  %v862_v48 = vsub.f32 %v847_v43, %v838_v41  ;;  %v866_v49 = vsub.f32 %v272_v47, %v271_v46 }
  0x95   :  { %v250_v45 = vsel %vm249_vm3, 1, %v662_v16  ;;  %v871_v51 = vand.u32 2147483647, %v219_v50 }
  0x98   :  { %120 = vrot.lane.b32.xlu1 %v725_v0, %s660_s22 }
  0x9c   :  { %143 = vrot.lane.b32.xlu1 %v844_v42, %s664_s2 }
  0x9f   :  { %v629_v44 = vpop.eup %628 }
  0xa0   :  { %594 = vmatmul.mubr.f32.vlgmr.msra.gmra.mxu0 %v629_v44  ;;  %251 = vrot.lane.b32.xlu1 %v250_v45, %s664_s2 }
  0xa4   :  { %257 = vrot.lane.b32.xlu1 %v862_v48, %s664_s2 }
  0xa8   :  { %275 = vrot.lane.b32.xlu1 %v866_v49, %s664_s2 }
  0xac   :  { %223 = vrot.lane.b32.xlu1 %v871_v51, %s664_s2 }
  0xb7   :  { %v886_v59 = vpop.xlane.xlu1 %43 }
  0xb8   :  { %v45_v5 = vsub.f32 %v804_v24, %v886_v59 }
  0xba   :  { %v46_v8 = vmul.f32 1.442695, %v45_v5 }
  0xc2   :  { %v875_v52 = vpop.xlane.xlu0 %75 }
  0xc3   :  { %v77_v55 = vsub.f32 %v811_v26, %v875_v52 }
  0xc5   :  { %v78_v56 = vmul.f32 1.442695, %v77_v55 }
  0xc7   :  { %630 = vpow2.f32 %v78_v56 }
  0xc8   :  { %632 = vpow2.f32 %v46_v8 }
  0xd4   :  { %v631_v57 = vpop.eup %630 }
  0xd5   :  { %v80_v58 = vsel %vm41_vm2, %v631_v57, 0.0  ;;  %v633_v9 = vpop.eup %632 }
  0xd6   :  { %81 = vadd.xlane.f32.xlu1 %v80_v58  ;;  %v48_v11 = vsel %vm41_vm2, %v633_v9, 0.0 }
  0xe9   :  { %v153_v15 = vpop.permute.xlu0 %152 }
  0xea   :  { %v155_v18 = vmul.f32 %v153_v15, %v816_v29 }
  0xf3   :  { %v213_v30 = vpop.permute.xlu0 %212 }
 0x106   :  { %v244_v60 = vpop.permute.xlu1 %243 }
 0x107   :  { %v246_v61 = vmul.f32 %v244_v60, %v241_v39 }
 0x109   :  { %263 = vrot.lane.b32.xlu0 %v246_v61, %s658_s17 }
 0x10a   :  { %v121_v62 = vpop.permute.xlu1 %120 }
 0x10b   :  { %v890_v63 = vmin.f32 %v834_v40, %v121_v62  ;;  %v181_v3 = vmax.f32 %v834_v40, %v121_v62  ;;  %v123_v19 = vsub.f32 %v834_v40, %v121_v62 }
 0x10d   :  { %v899_v4 = vsub.f32 %v890_v63, %v894_v2  ;;  %v907_v7 = vsub.f32 %v181_v3, %v180_v6  ;;  %vm158_vm6 = vcmp.gt.f32.partialorder %v890_v63, %v894_v2  ;;  %v924_v20 = vand.u32 2147483647, %v123_v19 }
 0x10e   :  { %v159_v17 = vsel %vm158_vm6, 1, %v662_v16  ;;  %v144_v23 = vpop.permute.xlu1 %143  ;;  %v215_v16 = vadd.f32 %v213_v30, %v824_v34 }
 0x10f   :  { %166 = vrot.lane.b32.xlu1 %v899_v4, %s664_s2  ;;  %v146_v44 = vmul.f32 %v144_v23, %v844_v42 }
 0x110   :  { %v221_v24 = vadd.f32 %v871_v51, %v215_v16 }
 0x112   :  { %v252_v28 = vpop.permute.xlu1 %251 }
 0x113   :  { %184 = vrot.lane.b32.xlu1 %v907_v7, %s664_s2  ;;  %vm253_vm9 = vcmp.ne.s32.totalorder %v252_v28, 0 }
 0x114   :  { %vm254_vm10 = vmand %vm249_vm3, %vm253_vm9 }
 0x116   :  { %v258_v29 = vpop.permute.xlu1 %257 }
 0x117   :  { %v260_v38 = vmul.f32 %v258_v29, %v862_v48  ;;  %v947_v48 = vpop.f32.mrf.mxu1 }
 0x119   :  { %v261_v31 = vsel %vm254_vm10, %v260_v38, 0.0 }
 0x11a   :  { %v276_v32 = vpop.permute.xlu1 %275 }
 0x11b   :  { %v278_v39 = vmul.f32 %v276_v32, %v866_v49  ;;  %v600_v49 = vpop.f32.mrf.mxu1 }
 0x11d   :  { %v280_v34 = vadd.f32 1e-07, %v278_v39 }
 0x11e   :  { %v224_v37 = vpop.permute.xlu1 %223 }
 0x11f   :  { %v226_v40 = vadd.f32 %v224_v37, %v221_v24  ;;  %634 = vrcp.f32 %v280_v34 }
 0x128   :  { %49 = vadd.xlane.f32.xlu0 %v48_v11 }
 0x12c   :  { %v635_v51 = vpop.eup %634 }
 0x137   :  { %89 = vadd.xlane.f32.xlu1 %v88_v14 }
 0x13e   :  { %160 = vrot.lane.b32.xlu0 %v159_v17, %s664_s2 }
 0x142   :  { %172 = vrot.lane.b32.xlu0 %v155_v18, %s660_s22 }
 0x148   :  { %127 = vrot.lane.b32.xlu1 %v924_v20, %s664_s2 }
 0x14c   :  { %410 = vperm.xlu1 %626, %v408_v21  }
 0x15f   :  { %v82_v41 = vpop.xlane.xlu1 %81 }
 0x160   :  { %v931_v26 = vpop.f32.mrf.mxu0 }
 0x161   :  { %59 = vadd.xlane.f32.xlu0 %v58_v25  ;;  %v404_v17 = vmax.f32 %v931_v26, 1e-30 }
 0x162   :  { %v595_v27 = vpop.f32.mrf.mxu0 }
 0x177   :  { %115 = vrot.lane.b32.xlu0 %v936_v36, %s664_s2 }
 0x17b   :  { %v264_v45 = vpop.permute.xlu0 %263  ;;  %228 = vrot.lane.b32.xlu0 %v226_v40, %s665_s1 }
 0x17c   :  { %v266_v0 = vadd.f32 %v264_v45, %v146_v44 }
 0x17e   :  { %v267_v46 = vsub.f32 %v266_v0, %v261_v31 }
 0x180   :  { %v268_v47 = vadd.f32 1e-07, %v267_v46  ;;  %v279_v50 = vsub.f32 %v278_v39, %v267_v46 }
 0x181   :  { %v167_v43 = vpop.permute.xlu1 %166 }
 0x182   :  { %636 = vrcp.f32 %v268_v47  ;;  %v282_v54 = vmul.f32 %v635_v51, %v279_v50  ;;  %v169_v11 = vmul.f32 %v167_v43, %v899_v4 }
 0x183   :  { %638 = vlog2.f32 %v82_v41 }
 0x185   :  { %v185_v61 = vpop.permute.xlu1 %184 }
 0x18f   :  { %v637_v42 = vpop.eup %636 }
 0x190   :  { %v270_v53 = vmul.f32 %v637_v42, %v261_v31  ;;  %v639_v57 = vpop.eup %638 }
 0x191   :  { %v84_v60 = vmul.f32 0.6931472, %v639_v57 }
 0x192   :  { %v283_v55 = vsub.f32 %v270_v53, %v282_v54 }
 0x193   :  { %v85_v62 = vadd.f32 %v84_v60, %v875_v52  ;;  %v187_v52 = vmul.f32 %v185_v61, %v907_v7 }
 0x194   :  { %v284_v56 = vsub.f32 1.0, %v283_v55 }
 0x195   :  { %v189_v15 = vadd.f32 1e-07, %v187_v52 }
 0x196   :  { %286 = vrot.lane.b32.xlu0 %v284_v56, %s665_s1 }
 0x1b1   :  { %v50_v58 = vpop.xlane.xlu0 %49 }
 0x1b2   :  { %640 = vlog2.f32 %v50_v58 }
 0x1b5   :  { %v161_v3 = vpop.permute.xlu0 %160 }
 0x1b6   :  { %vm162_vm12 = vcmp.ne.s32.totalorder %v161_v3, 0 }
 0x1b7   :  { %vm163_vm13 = vmand %vm158_vm6, %vm162_vm12 }
 0x1b8   :  { %v170_v12 = vsel %vm163_vm13, %v169_v11, 0.0 }
 0x1b9   :  { %v173_v9 = vpop.permute.xlu0 %172 }
 0x1ba   :  { %v175_v10 = vadd.f32 %v173_v9, %v146_v44 }
 0x1bc   :  { %v176_v13 = vsub.f32 %v175_v10, %v170_v12 }
 0x1be   :  { %v177_v14 = vadd.f32 1e-07, %v176_v13  ;;  %v188_v21 = vsub.f32 %v187_v52, %v176_v13 }
 0x1bf   :  { %v641_v18 = vpop.eup %640 }
 0x1c0   :  { %v90_v5 = vpop.xlane.xlu1 %89  ;;  %642 = vrcp.f32 %v177_v14  ;;  %v52_v63 = vmul.f32 0.6931472, %v641_v18 }
 0x1c1   :  { %v91_v6 = vsub.f32 %v85_v62, %v90_v5  ;;  %644 = vrcp.f32 %v189_v15 }
 0x1c2   :  { %646 = vlog2.f32 %v404_v17  ;;  %v53_v4 = vadd.f32 %v52_v63, %v886_v59 }
 0x1c3   :  { %v92_v8 = vsel %vm62_vm11, %v91_v6, 0.0 }
 0x1c4   :  { %93 = vadd.xlane.f32.xlu0 %v92_v8  ;;  %v128_v30 = vpop.permute.xlu1 %127 }
 0x1c8   :  { %v411_v59 = vpop.permute.xlu1 %410 }
 0x1c9   :  { %vm412_vm14 = vcmp.eq.s32.totalorder %v411_v59, 1 }
 0x1cd   :  { %v643_v19 = vpop.eup %642 }
 0x1ce   :  { %v179_v2 = vmul.f32 %v643_v19, %v170_v12  ;;  %v645_v22 = vpop.eup %644 }
 0x1cf   :  { %v191_v23 = vmul.f32 %v645_v22, %v188_v21  ;;  %v647_v33 = vpop.eup %646 }
 0x1d0   :  { %v406_v38 = vmul.f32 0.6931472, %v647_v33 }
 0x1d1   :  { %v192_v25 = vsub.f32 %v179_v2, %v191_v23 }
 0x1d2   :  { %v407_v44 = vadd.f32 %v406_v38, %v828_v35 }
 0x1d3   :  { %v193_v29 = vsub.f32 1.0, %v192_v25 }
 0x1d5   :  { %v194_v37 = vsel %vm62_vm11, %v193_v29, 0.0 }
 0x1ea   :  { %v60_v27 = vpop.xlane.xlu0 %59 }
 0x1eb   :  { %v61_v7 = vsub.f32 %v53_v4, %v60_v27 }
 0x1ed   :  { %v63_v28 = vsel %vm62_vm11, %v61_v7, 0.0 }
 0x1ee   :  { %v116_v32 = vpop.permute.xlu0 %115  ;;  %64 = vadd.xlane.f32.xlu1 %v63_v28 }
 0x1ef   :  { %v118_v26 = vadd.f32 %v116_v32, %v936_v36  ;;  %v413_v36 = vsel %vm412_vm14, %v407_v44, 0.0 }
 0x1f0   :  { %v415_v0 = vsel %vm414_vm15, %v413_v36, 0.0 }
 0x1f1   :  { %v125_v16 = vadd.f32 %v924_v20, %v118_v26  ;;  %v541_v20 = vld [vmem:[%s979_s4] ss:$0 sm:$0xff] }
 0x1f2   :  { %195 = vadd.xlane.f32.xlu1 %v194_v37  ;;  %v229_v40 = vpop.permute.xlu0 %228  ;;  %v507_v31 = vsub.f32 %v947_v48, %v541_v20 }
 0x1f3   :  { %v130_v24 = vadd.f32 %v128_v30, %v125_v16  ;;  %v231_v45 = vsel %vm62_vm11, %v229_v40, 0.0 }
 0x1f4   :  { %v508_v34 = vand.u32 2147483647, %v507_v31 }
 0x1f5   :  { %v131_v39 = vsel %vm62_vm11, %v130_v24, 0.0 }
 0x1f6   :  { %132 = vadd.xlane.f32.xlu0 %v131_v39  ;;  %vm509_vm1 = vcmp.lt.f32.partialorder %v508_v34, 0.5 }
 0x1f7   :  { %v510_v47 = vsel %vm509_vm1, %v730_v1, 0.0 }
 0x1f8   :  { %v511_v49 = vsel %vm309_vm0, %v510_v47, 0.0 }
 0x1fa   :  { %232 = vadd.xlane.f32.xlu0 %v231_v45 }
 0x1fe   :  { %416 = vadd.xlane.f32.xlu0 %v415_v0 }
 0x208   :  { %v287_v46 = vpop.permute.xlu0 %286 }
 0x209   :  { %v289_v35 = vsel %vm62_vm11, %v287_v46, 0.0 }
 0x20a   :  { %290 = vadd.xlane.f32.xlu1 %v289_v35 }
 0x20e   :  { %512 = vadd.xlane.f32.xlu1 %v511_v49 }
 0x24d   :  { %v94_v50 = vpop.xlane.xlu0 %93 }
 0x24e   :  { %v95_v51 = vrot.slane %v94_v50, 4 }
 0x250   :  { %v96_v42 = vadd.f32 %v95_v51, %v94_v50 }
 0x252   :  { %v97_v53 = vrot.slane %v96_v42, 2 }
 0x254   :  { %v98_v41 = vadd.f32 %v97_v53, %v96_v42 }
 0x256   :  { %v99_v61 = vrot.slane %v98_v41, 1 }
 0x258   :  { %v100_v10 = vadd.f32 %v99_v61, %v98_v41 }
 0x277   :  { %v65_v54 = vpop.xlane.xlu1 %64 }
 0x278   :  { %v66_v55 = vrot.slane %v65_v54, 4 }
 0x27a   :  { %v67_v56 = vadd.f32 %v66_v55, %v65_v54 }
 0x27b   :  { %v196_v48 = vpop.xlane.xlu1 %195 }
 0x27c   :  { %v68_v43 = vrot.slane %v67_v56, 2  ;;  %v197_v57 = vrot.slane %v196_v48, 4 }
 0x27e   :  { %v198_v58 = vadd.f32 %v197_v57, %v196_v48  ;;  %v69_v60 = vadd.f32 %v68_v43, %v67_v56 }
 0x27f   :  { %v133_v1 = vpop.xlane.xlu0 %132 }
 0x280   :  { %v199_v62 = vrot.slane %v198_v58, 2  ;;  %v134_v3 = vrot.slane %v133_v1, 4  ;;  %v70_v5 = vrot.slane %v69_v60, 1 }
 0x282   :  { %v135_v6 = vadd.f32 %v134_v3, %v133_v1  ;;  %v71_v8 = vadd.f32 %v70_v5, %v69_v60  ;;  %v200_v11 = vadd.f32 %v199_v62, %v198_v58 }
 0x283   :  { %v233_v9 = vpop.xlane.xlu0 %232 }
 0x284   :  { %v136_v12 = vrot.slane %v135_v6, 2  ;;  %v234_v13 = vrot.slane %v233_v9, 4  ;;  %601 = vpush %v71_v8  ;;  %v201_v15 = vrot.slane %v200_v11, 1 }
 0x285   :  { %603 = vpush %v100_v10 }
 0x286   :  { %v235_v52 = vadd.f32 %v234_v13, %v233_v9  ;;  %v137_v14 = vadd.f32 %v136_v12, %v135_v6  ;;  %v202_v22 = vadd.f32 %v201_v15, %v200_v11 }
 0x287   :  { %v417_v18 = vpop.xlane.xlu0 %416 }
 0x288   :  { %v236_v17 = vrot.slane %v235_v52, 2  ;;  %v138_v19 = vrot.slane %v137_v14, 1  ;;  %v418_v2 = vrot.slane %v417_v18, 4 }
 0x28a   :  { %v139_v21 = vadd.f32 %v138_v19, %v137_v14  ;;  %v237_v63 = vadd.f32 %v236_v17, %v235_v52  ;;  %v419_v25 = vadd.f32 %v418_v2, %v417_v18 }
 0x28c   :  { %605 = vpush %v139_v21  ;;  %v238_v23 = vrot.slane %v237_v63, 1  ;;  %v420_v27 = vrot.slane %v419_v25, 2 }
 0x28d   :  { %607 = vpush %v202_v22 }
 0x28e   :  { %v239_v4 = vadd.f32 %v238_v23, %v237_v63  ;;  %v421_v30 = vadd.f32 %v420_v27, %v419_v25 }
 0x290   :  { %609 = vpush %v239_v4  ;;  %v422_v24 = vrot.slane %v421_v30, 1 }
 0x292   :  { %v423_v44 = vadd.f32 %v422_v24, %v421_v30 }
 0x293   :  { %v291_v7 = vpop.xlane.xlu1 %290 }
 0x294   :  { %v292_v28 = vrot.slane %v291_v7, 4 }
 0x296   :  { %v293_v29 = vadd.f32 %v292_v28, %v291_v7 }
 0x297   :  { %v513_v32 = vpop.xlane.xlu1 %512 }
 0x298   :  { %v294_v26 = vrot.slane %v293_v29, 2  ;;  %v514_v33 = vrot.slane %v513_v32, 4 }
 0x29a   :  { %v515_v16 = vadd.f32 %v514_v33, %v513_v32  ;;  %v295_v37 = vadd.f32 %v294_v26, %v293_v29 }
 0x29c   :  { %v516_v38 = vrot.slane %v515_v16, 2  ;;  %v296_v59 = vrot.slane %v295_v37, 1 }
 0x29e   :  { %v517_v39 = vadd.f32 %v516_v38, %v515_v16  ;;  %v297_v40 = vadd.f32 %v296_v59, %v295_v37 }
 0x2a0   :  { %611 = vpush %v297_v40  ;;  %v518_v45 = vrot.slane %v517_v39, 1 }
 0x2a1   :  { %613 = vpush %v423_v44 }
 0x2a2   :  { %v519_v36 = vadd.f32 %v518_v45, %v517_v39 }
 0x2a4   :  { %615 = vpush %v519_v36 }
 0x2b5   :  { %s602_s4 = spop %601 }
 0x2b6   :  { %s604_s22 = spop %603 }
 0x2b7   :  { %s102_s18 = sadd.f32 %s604_s22, %s602_s4 }
 0x2b9   :  { %s299_s8 = smul.f32 0.25, %s102_s18 }
 0x2bd   :  { %s606_s16 = spop %605 }
 0x2be   :  { %s300_s19 = smul.f32 0.625, %s606_s16  ;;  %s608_s20 = spop %607 }
 0x2c0   :  { %s301_s0 = sadd.f32 %s300_s19, %s299_s8 }
 0x2c1   :  { %s610_s21 = spop %609 }
 0x2c2   :  { %s302_s7 = sadd.f32 %s608_s20, %s301_s0  ;;  %s303_s23 = smul.f32 0.625, %s610_s21 }
 0x2c4   :  { %s304_s26 = sadd.f32 %s303_s23, %s302_s7 }
 0x2d1   :  { %s612_s24 = spop %611 }
 0x2d2   :  { %s614_s25 = spop %613  ;;  %s305_s29 = sadd.f32 %s612_s24, %s304_s26 }
 0x2d5   :  { %s616_s27 = spop %615 }
 0x2d6   :  { %s522_s28 = ssub.f32 %s614_s25, %s616_s27 }
 0x2d8   :  { %s523_s30 = smul.f32 0.625, %s522_s28 }
 0x2da   :  { %s524_s9 = sadd.f32 %s523_s30, %s305_s29 }
 0x2dc   :  { %526 = sst [smem:[#allocation2]] %s524_s9 }
 0x2dd   :  { %534 = dma.smem_to_hbm %s666_s11, 16, %s985_s10, [#allocation3]  }
 0x2de   :  { %656 = dma.done.wait [#allocation3], 16  }
 0x2df   :  { %657 = vsyncadd [#allocation3], 4294967280 }
 0x2e0   :  { %538 = sfence }
 0x2e1   :  { %539 = vsyncpa [#allocation3], 1 }

</bundles_post_ra>
